<compile_context>
chip_gen: v7x
topology: tpu7x:2x2x1
jax: 0.10.0
libtpu: 0.0.40
codegen_flags: <defaults>
</compile_context>

<pallas_src>
import jax
import jax.numpy as jnp
from jax.experimental import pallas as pl
from jax.experimental.pallas import tpu as pltpu


# ----------------------------------------------------------------------------
# Kernel: one batch tile of  out = x_tile @ w_eff + b_eff
# (w_eff / b_eff are already DropConnect-masked and rescaled in the wrapper.)
# ----------------------------------------------------------------------------
def _mcdc_fc_kernel(x_ref, w_ref, b_ref, o_ref):
    acc = jnp.dot(x_ref[...], w_ref[...], preferred_element_type=jnp.float32)
    o_ref[...] = (acc + b_ref[...]).astype(o_ref.dtype)


# ----------------------------------------------------------------------------
# DropConnect parameters (computed once per forward call, fused by XLA).
#   dropout(W, p) * p  ==  where(u >= p, W, 0) * (p / (1 - p))
# Masking stays in the parameter dtype so bf16 weights keep the bf16 MXU path.
# ----------------------------------------------------------------------------
def _effective_params(w, b, p, key):
    in_feat, out_feat = w.shape
    kw, kb = jax.random.split(key, 2)
    u_w = jax.random.uniform(kw, (in_feat, out_feat), dtype=jnp.float32)
    u_b = jax.random.uniform(kb, (1, out_feat), dtype=jnp.float32)
    scale = (p / (1.0 - p)) if p < 1.0 else 0.0
    w_eff = jnp.where(u_w >= p, w, jnp.zeros((), w.dtype)) * jnp.asarray(scale, w.dtype)
    b_eff = (jnp.where(u_b >= p, b.reshape(1, out_feat), jnp.zeros((), b.dtype))
             * jnp.asarray(scale, b.dtype))
    return w_eff, b_eff


def _round_up(x, m):
    return ((x + m - 1) // m) * m


def _vmem_tile_bytes(rows, cols, itemsize):
    # VMEM layout pads the last two dims to the (8, 128) tile.
    return _round_up(max(rows, 1), 8) * _round_up(max(cols, 1), 128) * itemsize


def _choose_block_b(B, in_feat, out_feat, x_itemsize, o_itemsize, tile_budget=4 << 20):
    """Largest multiple-of-8 batch tile whose streamed (x + out) rows fit the budget."""
    if B <= 8:
        return B
    row_bytes = (_round_up(in_feat, 128) * x_itemsize
                 + _round_up(out_feat, 128) * o_itemsize)
    bb = max(8, tile_budget // max(row_bytes, 1))
    bb = min(bb, B)
    return max(8, (bb // 8) * 8)


# ----------------------------------------------------------------------------
# Forward wrapper.
# ----------------------------------------------------------------------------
def mcdc_fc_forward(x, w, b, *, p, key, block_b=None, force_pallas=False,
                    xla_dispatch_elems=1 << 18):
    """Pallas implementation of MCDC_FC.forward.

    x: [B, in_feat], w: [in_feat, out_feat], b: [out_feat].  Returns [B, out_feat].
    A fresh `key` per call gives a fresh MC-DropConnect sample, matching
    F.dropout(..., training=True) semantics.
    """
    B, in_feat = x.shape
    in_w, out_feat = w.shape
    assert in_feat == in_w and b.shape == (out_feat,)

    w_eff, b_eff = _effective_params(w, b, p, key)
    out_dtype = x.dtype

    # Tiny problems: the fused XLA GEMM is as fast or faster than paying the
    # pallas_call launch + per-step overhead (e.g. 16x32x8 gate shapes).
    if (not force_pallas and block_b is None
            and B * in_feat * out_feat < xla_dispatch_elems):
        out = jnp.dot(x, w_eff, preferred_element_type=jnp.float32) + b_eff
        return out.astype(out_dtype)

    if block_b is None:
        block_b = _choose_block_b(B, in_feat, out_feat,
                                  x.dtype.itemsize, jnp.dtype(out_dtype).itemsize)
    assert block_b == B or block_b % 8 == 0, "batch tile must be a multiple of 8"

    grid = (pl.cdiv(B, block_b),)

    # --- VMEM accounting: set the scoped limit from actual buffer bytes -------
    x_bytes = 2 * _vmem_tile_bytes(block_b, in_feat, x.dtype.itemsize)            # double-buffered
    o_bytes = 2 * _vmem_tile_bytes(block_b, out_feat, jnp.dtype(out_dtype).itemsize)  # double-buffered
    w_bytes = _vmem_tile_bytes(in_feat, out_feat, w_eff.dtype.itemsize)           # single-buffered
    bias_bytes = _vmem_tile_bytes(1, out_feat, b_eff.dtype.itemsize)              # single-buffered
    needed = x_bytes + o_bytes + w_bytes + bias_bytes
    vmem_limit = int(min(48 * 1024 * 1024, max(needed + (4 << 20), 16 * 1024 * 1024)))

    return pl.pallas_call(
        _mcdc_fc_kernel,
        out_shape=jax.ShapeDtypeStruct((B, out_feat), out_dtype),
        grid_spec=pltpu.PrefetchScalarGridSpec(
            num_scalar_prefetch=0,
            grid=grid,
            in_specs=[
                # streamed: one batch tile per grid step (default double-buffered DMA)
                pl.BlockSpec((block_b, in_feat), lambda i: (i, 0)),
                # resident: constant block index, single-buffered (loaded once)
                pl.BlockSpec((in_feat, out_feat), lambda i: (0, 0),
                             pipeline_mode=pl.Buffered(1)),
                pl.BlockSpec((1, out_feat), lambda i: (0, 0),
                             pipeline_mode=pl.Buffered(1)),
            ],
            out_specs=pl.BlockSpec((block_b, out_feat), lambda i: (i, 0)),
        ),
        compiler_params=pltpu.CompilerParams(
            # Batch tiles are independent -> shard across v7x's two TensorCores.
            dimension_semantics=("parallel",),
            vmem_limit_bytes=vmem_limit,
        ),
    )(x, w_eff, b_eff)


if __name__ == "__main__":
    # Small shapes implied by the module: batch=16, in_feat=32, out_feat=8.
    B, IN, OUT = 16, 32, 8
    p = 0.5

    key = jax.random.PRNGKey(0)
    kx, kw, kb, kdrop = jax.random.split(key, 4)

    x = jax.random.normal(kx, (B, IN), dtype=jnp.float32)
    # xavier_normal-ish init for W, standard normal for bias (matches module init).
    std = (2.0 / (IN + OUT)) ** 0.5
    w = std * jax.random.normal(kw, (IN, OUT), dtype=jnp.float32)
    b = jax.random.normal(kb, (OUT,), dtype=jnp.float32)

    # block_b=8 -> grid=(2,) so the batch-tiled pipeline is actually exercised;
    # force_pallas bypasses the small-shape XLA dispatch so the kernel runs here.
    out = mcdc_fc_forward(x, w, b, p=p, key=kdrop, block_b=8, force_pallas=True)
    out = jax.block_until_ready(out)

    # ---- reference (same masked parameters as the kernel) --------------------
    w_eff, b_eff = _effective_params(w, b, p, kdrop)
    ref = x @ w_eff + b_eff

    assert out.shape == (B, OUT)
    assert jnp.allclose(out, ref, atol=1e-5, rtol=1e-5), "mismatch vs reference"
    # Sanity: with p=0.5 some connections must be dropped and some kept.
    n_dropped = int(jnp.sum(w_eff == 0.0))
    assert 0 < n_dropped < IN * OUT

    print("KERNEL_OK")
</pallas_src>

<mosaic_0001>
module attributes {stable_mosaic.version = 11 : i64} {
  func.func @_mcdc_fc_kernel(%arg0: i32, %arg1: memref<8x32xf32, #tpu.memory_space<vmem>>, %arg2: memref<32x8xf32, #tpu.memory_space<vmem>>, %arg3: memref<1x8xf32, #tpu.memory_space<vmem>>, %arg4: memref<8x8xf32, #tpu.memory_space<vmem>>) attributes {dimension_semantics = [#tpu.dimension_semantics<parallel>], iteration_bounds = array<i64: 2>, scalar_prefetch = 0 : i64, scratch_operands = 0 : i64, tpu.core_type = #tpu.core_type<tc>, window_params = [{transform_indices = @transform_0, window_bounds = array<i64: 8, 32>}, {pipeline_mode = #tpu.pipeline_mode<synchronous>, transform_indices = @transform_1, window_bounds = array<i64: 32, 8>}, {pipeline_mode = #tpu.pipeline_mode<synchronous>, transform_indices = @transform_2, window_bounds = array<i64: 1, 8>}, {transform_indices = @transform_3, window_bounds = array<i64: 8, 8>}]} {
    %c0 = arith.constant 0 : index
    %c0_0 = arith.constant 0 : index
    %0 = vector.load %arg1[%c0, %c0_0] : memref<8x32xf32, #tpu.memory_space<vmem>>, vector<8x32xf32>
    %c0_1 = arith.constant 0 : index
    %c0_2 = arith.constant 0 : index
    %1 = vector.load %arg2[%c0_1, %c0_2] : memref<32x8xf32, #tpu.memory_space<vmem>>, vector<32x8xf32>
    %cst = arith.constant dense<0.000000e+00> : vector<8x8xf32>
    %2 = tpu.matmul %0, %1, %cst {dimension_numbers = #tpu.dot_dimension_numbers<[1], [0], [0], [1], [0, 0, 1, 1], [], []>} : vector<8x32xf32>, vector<32x8xf32>, vector<8x8xf32> -> vector<8x8xf32>
    %c0_3 = arith.constant 0 : index
    %c0_4 = arith.constant 0 : index
    %3 = vector.load %arg3[%c0_3, %c0_4] : memref<1x8xf32, #tpu.memory_space<vmem>>, vector<1x8xf32>
    %4 = vector.broadcast %3 : vector<1x8xf32> to vector<8x8xf32>
    %5 = arith.addf %2, %4 : vector<8x8xf32>
    %c0_5 = arith.constant 0 : index
    %c0_6 = arith.constant 0 : index
    %6 = vector.load %arg4[%c0_5, %c0_6] : memref<8x8xf32, #tpu.memory_space<vmem>>, vector<8x8xf32>
    tpu.vector_store %arg4[%c0_5, %c0_6], %5 {strides = array<i32>} : memref<8x8xf32, #tpu.memory_space<vmem>>, vector<8x8xf32>,
    return
  }
  func.func @transform_0(%arg0: i32) -> (i32, i32) {
    %c0_i32 = arith.constant 0 : i32
    %c0_i32_0 = arith.constant 0 : i32
    return %arg0, %c0_i32 : i32, i32
  }
  func.func @transform_1(%arg0: i32) -> (i32, i32) {
    %c0_i32 = arith.constant 0 : i32
    %c0_i32_0 = arith.constant 0 : i32
    %c0_i32_1 = arith.constant 0 : i32
    return %c0_i32, %c0_i32_0 : i32, i32
  }
  func.func @transform_2(%arg0: i32) -> (i32, i32) {
    %c0_i32 = arith.constant 0 : i32
    %c0_i32_0 = arith.constant 0 : i32
    %c0_i32_1 = arith.constant 0 : i32
    return %c0_i32, %c0_i32_0 : i32, i32
  }
  func.func @transform_3(%arg0: i32) -> (i32, i32) {
    %c0_i32 = arith.constant 0 : i32
    %c0_i32_0 = arith.constant 0 : i32
    return %arg0, %c0_i32 : i32, i32
  }
}

</mosaic_0001>

<bundles_post_ra>
// kernel: tpu_custom_call.1
= control target key start
LH: loop header
LB: loop body
LE: loop exit
PB: predicated region body
PF: predicated region fallthrough
CT: control target
= control target key end

     0   :  { %s382_s12 = smov 0   ;;  %s414_s0 = inlined_call_operand.vmem [shape: f32[16,32], index: 0, kind: input, shape index: {}]   ;;  %s415_s1 = inlined_call_operand.vmem [shape: f32[32,8], index: 1, kind: input, shape index: {}]   ;;  %s416_s2 = inlined_call_operand.vmem [shape: f32[1,8], index: 2, kind: input, shape index: {}]   ;;  %s417_s3 = inlined_call_operand.vmem [shape: f32[16,8], index: 3, kind: output, shape index: {}]  }
   0x1 LB: > { %s307_s13 = sadd.s32 4294967295, %s357_s12   ;;  %p311_p0 = scmp.ge.s32.totalorder %s357_s12, 1  ;;  %s357_s12 = sphi %s382_s12, %s13_s12  }
   0x2   : > { %p136_p1 = scmp.lt.s32.totalorder %s357_s12, 3 }
   0x4   : > { %p137_p2 = pnand %p311_p0, %p136_p1 }
   0x5   : > { %v167_v0 = vld [vmem:[%s415_s1] sm:$0xff] (!%p137_p2)  ;;  %v168_v1 = vld [vmem:[%s415_s1 + $0x8] sm:$0xff] (!%p137_p2)  ;;  %v169_v2 = vld [vmem:[%s415_s1 + $0x10] sm:$0xff] (!%p137_p2)  ;;  %v359_v3 = vmov (!%p137_p2), 0.0|0.0   ;;  %vm360_vm0 = vmmov (!%p137_p2), 0   ;;  %v361_v6 = vmov (!%p137_p2), 0.0  }
   0x6   : > { %140 = sbr.rel (%p137_p2) target bundleno = 232 (0xe8), region = 32  ;;  %334 = vmatprep.subr.bf16.mxu0 (!%p137_p2), %v359_v3  ;;  %v335_v4 = vpack.c.bf16 (!%p137_p2), %v168_v1, %v167_v0  ;;  %v170_v5 = vld [vmem:[%s415_s1 + $0x18] sm:$0xff] (!%p137_p2)  ;;  %331 = vmatprep.mubr.msk.f32.mxu0 (!%p137_p2), %vm360_vm0, %v361_v6  ;;  %p158_p3 = scmp.lt.s32.totalorder (!%p137_p2), %s307_s13, 1  ;;  %vm178_vm1 = vcmask (!%p137_p2), 261120   ;;  %v314_v9 = vld [vmem:[%s416_s2] ss:$0 sm:$0xff] (!%p137_p2) }
   0x7   : > { %v338_v7 = vpack.c.bf16 (!%p137_p2), %v170_v5, %v169_v2  ;;  %vm252_vm2 = vcmask (!%p137_p2), 64512  }
   0x8   : > { %336 = vmatpush3.bf16.msra.mxu0 (!%p137_p2), %v335_v4 }
   0x9   : > { %337 = vmatprep.subr.bf16.mxu0 (!%p137_p2), %v359_v3 }
   0xc   : > { %339 = vmatpush3.bf16.msra.mxu0 (!%p137_p2), %v338_v7 }
   0xd   : > { %s419_s13 = smov (!%p158_p3, %s307_s13), 1 }
   0xe   : > { %s312_s22 = sshll.u32 %s419_s13, 3 }
   0xf   : > { %s161_s25 = scalar_lea.vmem %s414_s0, %s312_s22  ;;  %s165_s30 = scalar_lea.vmem %s417_s3, %s312_s22 }
  0x10   : > { %v166_v8 = vld [vmem:[%s161_s25] sm:$0xff] }
  0x11   : > { %332 = vmatmul.mubr.msk.f32.vlgmr.msra.gmra.mrb[0].mxu0 %vm178_vm1, %v166_v8 }
  0xe4   : > { %v248_v10 = vpop.f32.mrb[0].mxu0 }
  0xe5   : > { %v249_v11 = vadd.f32 %v314_v9, %v248_v10  ;;  %v333_v12 = vpop.f32.mrb[1].mxu0 }
  0xe7   : > { %253 = vst.msk [vmem:[%s165_s30] sm:$0xff] %vm252_vm2, %v249_v11 }
  0xe8 PF: > { %s13_s12 = sadd.s32 1, %s357_s12  }
  0xe9   : > { %p10_p4 = scmp.ge.s32.totalorder %s13_s12, 4  }
  0xeb   :  { %12 = sbr.rel (!%p10_p4) target bundleno = 1 (0x1), region = 62 }

</bundles_post_ra>
